<compile_context>
chip_gen: v6e
topology: v6e:2x2x1
jax: 0.10.0
libtpu: 0.0.40
codegen_flags: <defaults>
</compile_context>

<pallas_src>
import functools
import math

import jax
import jax.numpy as jnp
import numpy as np
from jax import lax
from jax.experimental import pallas as pl
from jax.experimental.pallas import tpu as pltpu


def _pick_tile(dim, cap, align):
    """Largest tile <= cap that divides `dim` and is a multiple of `align`.
    Falls back to the full dim (block == array dim is always legal)."""
    if dim <= cap:
        return dim
    for t in range(cap, align - 1, -1):
        if dim % t == 0 and t % align == 0:
            return t
    return dim


def _heads_per_group(head_num, head_dim):
    """Smallest head group g such that g*head_dim is a multiple of 128 lanes
    (or the full embed dim).  g==1 for head_dim>=128 (heads fully on the grid),
    g==2 for head_dim==64 (two heads packed per 128-lane group)."""
    if head_dim % 128 == 0:
        return 1
    if 128 % head_dim == 0:
        g = 128 // head_dim
        if head_num % g == 0:
            return g
    return head_num


# ---------------------------------------------------------------------------
# Kernel 1: fused, N-tiled QKV projection
#   grid = (3, M//tm, E//tn, E//tk); reduction k innermost; single (tm, tn)
#   f32 accumulator; weights stored (in, out) in compute_dtype.
# ---------------------------------------------------------------------------
def _qkv_proj_kernel(xq_ref, xk_ref, xv_ref, w_ref, b_ref, o_ref, acc_ref, *,
                     compute_dtype):
    j = pl.program_id(0)              # 0 = query, 1 = key, 2 = value
    k = pl.program_id(3)              # reduction step
    nk = pl.num_programs(3)

    @pl.when(k == 0)
    def _init():
        acc_ref[...] = jnp.zeros(acc_ref.shape, acc_ref.dtype)

    w = w_ref[...]                    # (tk, tn), already in compute_dtype

    @pl.when(j == 0)
    def _dot_q():
        acc_ref[...] += jnp.dot(xq_ref[...].astype(compute_dtype), w,
                                preferred_element_type=jnp.float32)

    @pl.when(j == 1)
    def _dot_k():
        acc_ref[...] += jnp.dot(xk_ref[...].astype(compute_dtype), w,
                                preferred_element_type=jnp.float32)

    @pl.when(j == 2)
    def _dot_v():
        acc_ref[...] += jnp.dot(xv_ref[...].astype(compute_dtype), w,
                                preferred_element_type=jnp.float32)

    @pl.when(k == nk - 1)
    def _finalize():
        y = acc_ref[...] + b_ref[...].astype(jnp.float32)   # bias broadcast
        o_ref[...] = y.astype(o_ref.dtype)


def qkv_project(xq, xk, xv, w_qkv, b_qkv, *, out_dtype, compute_dtype):
    """xq/xk/xv: (M, E) f32; w_qkv: (3, E, E) [in, out] in compute_dtype;
    b_qkv: (3, 1, E) f32.  Returns stacked projections (3, M, E) in out_dtype."""
    M, E = xq.shape
    tm = _pick_tile(M, 256, 8)        # row tile over flattened B*S
    tn = _pick_tile(E, 256, 128)      # output-column tile
    tk = _pick_tile(E, 512, 128)      # reduction tile
    grid = (3, M // tm, E // tn, E // tk)

    # Activation index maps only move while their own projection j is active,
    # so Pallas skips re-DMA of the two unused inputs on every step.
    def x_map(which):
        def index_map(j, i, n, k):
            live = j == which
            return (jnp.where(live, i, 0), jnp.where(live, k, 0))
        return index_map

    x_specs = [pl.BlockSpec((tm, tk), x_map(which)) for which in range(3)]
    w_spec = pl.BlockSpec((None, tk, tn), lambda j, i, n, k: (j, k, n))
    b_spec = pl.BlockSpec((None, 1, tn), lambda j, i, n, k: (j, 0, n))
    o_spec = pl.BlockSpec((None, tm, tn), lambda j, i, n, k: (j, i, n))

    xb = xq.dtype.itemsize
    wb = np.dtype(compute_dtype).itemsize
    ob = np.dtype(out_dtype).itemsize
    vmem_bytes = (2 * (3 * tm * tk * xb + tk * tn * wb + 8 * tn * 4 + tm * tn * ob)
                  + tm * tn * 4)
    vmem_limit = int(min(64 << 20, max(32 << 20, 2 * vmem_bytes)))

    kernel = functools.partial(_qkv_proj_kernel, compute_dtype=compute_dtype)
    return pl.pallas_call(
        kernel,
        out_shape=jax.ShapeDtypeStruct((3, M, E), out_dtype),
        grid_spec=pltpu.PrefetchScalarGridSpec(
            num_scalar_prefetch=0,
            grid=grid,
            in_specs=[*x_specs, w_spec, b_spec],
            out_specs=o_spec,
            scratch_shapes=[pltpu.VMEM((tm, tn), jnp.float32)]),
        compiler_params=pltpu.CompilerParams(
            dimension_semantics=("parallel", "parallel", "parallel", "arbitrary"),
            vmem_limit_bytes=vmem_limit),
        cost_estimate=pl.CostEstimate(
            flops=2 * 3 * M * E * E,
            transcendentals=0,
            bytes_accessed=(3 * (E // tn) * M * E * xb        # activation re-stream
                            + (M // tm) * 3 * E * E * wb      # weight re-stream
                            + 3 * M * E * ob)),
    )(xq, xk, xv, w_qkv, b_qkv)


# ---------------------------------------------------------------------------
# Kernel 2: flash attention (online softmax), head groups on the grid
#   grid = (batch, head-group, q-tile, kv-tile); lane-dense blocks (tq, g*D);
#   output written straight into (B, S, E).
# ---------------------------------------------------------------------------
def _flash_attn_kernel(q_ref, k_ref, v_ref, o_ref, m_sc, l_sc, acc_sc, *,
                       heads_per_group, head_dim, compute_dtype):
    kv = pl.program_id(3)
    g, D = heads_per_group, head_dim

    @pl.when(kv == 0)
    def _init():
        m_sc[...] = jnp.full(m_sc.shape, -jnp.inf, m_sc.dtype)
        l_sc[...] = jnp.zeros(l_sc.shape, l_sc.dtype)
        acc_sc[...] = jnp.zeros(acc_sc.shape, acc_sc.dtype)

    q = q_ref[...]                                        # (tq,  g*D)
    k = k_ref[...]                                        # (tkv, g*D)
    v = v_ref[...]                                        # (tkv, g*D)

    # Static unroll over the heads of the group (g is 1 or 2 at realistic
    # head_dim); only one (tq, tkv) score tile is live per head.
    for h in range(g):
        sl = slice(h * D, (h + 1) * D)
        # 1/sqrt(D) already folded into the query projection weights.
        s = lax.dot_general(q[:, sl].astype(compute_dtype),
                            k[:, sl].astype(compute_dtype),
                            (((1,), (1,)), ((), ())),
                            preferred_element_type=jnp.float32)   # (tq, tkv)
        m_prev = m_sc[h]
        m_new = jnp.maximum(m_prev, jnp.max(s, axis=-1, keepdims=True))
        alpha = jnp.exp(m_prev - m_new)
        p = jnp.exp(s - m_new)
        l_sc[h] = alpha * l_sc[h] + jnp.sum(p, axis=-1, keepdims=True)
        pv = jnp.dot(p.astype(compute_dtype), v[:, sl].astype(compute_dtype),
                     preferred_element_type=jnp.float32)          # (tq, D)
        acc_sc[h] = alpha * acc_sc[h] + pv
        m_sc[h] = m_new

    @pl.when(kv == pl.num_programs(3) - 1)
    def _finalize():
        parts = [acc_sc[h] * pl.reciprocal(l_sc[h], approx=True)
                 for h in range(g)]
        out = parts[0] if g == 1 else jnp.concatenate(parts, axis=-1)
        o_ref[...] = out.astype(o_ref.dtype)                      # (tq, g*D)


def flash_attention(qkv, batch, seq, head_num, head_dim, *, out_dtype,
                    compute_dtype):
    """qkv: (3, B*S, E) stacked lane-dense projections.  Returns (B, S, E)."""
    E = head_num * head_dim
    g = _heads_per_group(head_num, head_dim)
    gd = g * head_dim
    num_groups = head_num // g
    qkv = qkv.reshape(3, batch, seq, E)                   # free reshape

    tq = _pick_tile(seq, 256, 8)
    tkv = _pick_tile(seq, 256, 8)

    q_spec = pl.BlockSpec((None, None, tq, gd),
                          lambda b, hg, qi, ki: (0, b, qi, hg))
    k_spec = pl.BlockSpec((None, None, tkv, gd),
                          lambda b, hg, qi, ki: (1, b, ki, hg))
    v_spec = pl.BlockSpec((None, None, tkv, gd),
                          lambda b, hg, qi, ki: (2, b, ki, hg))
    o_spec = pl.BlockSpec((None, tq, gd),
                          lambda b, hg, qi, ki: (b, qi, hg))

    qb = qkv.dtype.itemsize
    ob = np.dtype(out_dtype).itemsize
    vmem_bytes = (2 * (tq + 2 * tkv) * gd * qb             # q/k/v double-buffered
                  + 2 * tq * gd * ob                       # output
                  + (g * tq * head_dim + 2 * g * tq * 128) * 4   # acc + m + l
                  + 2 * g * tq * max(tkv, 128) * 4)        # live s / p estimate
    vmem_limit = int(min(64 << 20, max(32 << 20, 2 * vmem_bytes)))

    kernel = functools.partial(_flash_attn_kernel, heads_per_group=g,
                               head_dim=head_dim, compute_dtype=compute_dtype)
    return pl.pallas_call(
        kernel,
        out_shape=jax.ShapeDtypeStruct((batch, seq, E), out_dtype),
        grid_spec=pltpu.PrefetchScalarGridSpec(
            num_scalar_prefetch=0,
            grid=(batch, num_groups, seq // tq, seq // tkv),
            in_specs=[q_spec, k_spec, v_spec],
            out_specs=o_spec,
            scratch_shapes=[pltpu.VMEM((g, tq, 1), jnp.float32),
                            pltpu.VMEM((g, tq, 1), jnp.float32),
                            pltpu.VMEM((g, tq, head_dim), jnp.float32)]),
        compiler_params=pltpu.CompilerParams(
            dimension_semantics=("parallel", "parallel", "parallel", "arbitrary"),
            vmem_limit_bytes=vmem_limit),
        cost_estimate=pl.CostEstimate(
            flops=4 * batch * head_num * seq * seq * head_dim,
            transcendentals=batch * head_num * seq * seq,
            bytes_accessed=(batch * seq * E * qb
                            + 2 * (seq // tq) * batch * seq * E * qb
                            + batch * seq * E * ob)),
    )(qkv, qkv, qkv)


# ---------------------------------------------------------------------------
# Module wrapper
# ---------------------------------------------------------------------------
class MultiHeadAttentionPallas:
    def __init__(self, embed_dim, head_num, key, dropout=0.0,
                 compute_dtype=jnp.bfloat16):
        assert embed_dim % head_num == 0
        assert dropout == 0.0  # TODO(synk): inference only; dropout not wired in.
        self.embed_dim = embed_dim
        self.head_num = head_num
        self.head_dim = embed_dim // head_num
        # MXU/storage dtype for the weights and the qkv intermediate.  bf16
        # (default) doubles MXU throughput and halves the dominant HBM streams
        # on v5e/v6e/v7x; accumulation and softmax math stay f32 in-kernel.
        self.compute_dtype = compute_dtype

        # Deterministic synthetic parameters; PyTorch Linear stores W as (out, in).
        keys = jax.random.split(key, 6)
        bound = 1.0 / math.sqrt(embed_dim)
        ws, bs = [], []
        for i in range(3):
            w = jax.random.uniform(keys[2 * i], (embed_dim, embed_dim),
                                   jnp.float32, -bound, bound)
            b = jax.random.uniform(keys[2 * i + 1], (embed_dim,),
                                   jnp.float32, -bound, bound)
            ws.append(w.T)                        # store (in, out): kernel does x @ W^T
            bs.append(b)
        # Unfolded f32 copies (used only by the pure-JAX reference).
        self.w_ref = jnp.stack(ws)                # (3, E, E)
        self.b_ref = jnp.stack(bs)                # (3, E)
        # Kernel parameters: fold the 1/sqrt(D) softmax scale into the query
        # projection so the flash kernel never re-scales the resident q block.
        scale = 1.0 / math.sqrt(self.head_dim)
        w_fold = self.w_ref.at[0].multiply(scale)
        b_fold = self.b_ref.at[0].multiply(scale)
        self.w_qkv = w_fold.astype(compute_dtype)         # (3, E, E)
        self.b_qkv = b_fold[:, None, :]                    # (3, 1, E) f32

    def __call__(self, query, key, value, mask=None):
        assert mask is None  # TODO(synk): mask not wired in.
        B, S, E = query.shape
        assert key.shape == (B, S, E) and value.shape == (B, S, E)
        qkv = qkv_project(query.reshape(B * S, E), key.reshape(B * S, E),
                          value.reshape(B * S, E), self.w_qkv, self.b_qkv,
                          out_dtype=self.compute_dtype,
                          compute_dtype=self.compute_dtype)       # (3, B*S, E)
        return flash_attention(qkv, B, S, self.head_num, self.head_dim,
                               out_dtype=jnp.float32,
                               compute_dtype=self.compute_dtype)  # (B, S, E)


# ---------------------------------------------------------------------------
# Pure-JAX reference for validation (mirrors the PyTorch module exactly).
# ---------------------------------------------------------------------------
def reference_forward(mha, query, key, value):
    B, S, E = query.shape
    H, D = mha.head_num, mha.head_dim
    proj = []
    for j, x in enumerate((query, key, value)):
        y = x.reshape(B * S, E) @ mha.w_ref[j] + mha.b_ref[j]
        proj.append(y.reshape(B, S, H, D).transpose(0, 2, 1, 3))
    q, k, v = proj
    s = jnp.einsum("bhqd,bhkd->bhqk", q, k) / jnp.sqrt(jnp.float32(D))
    p = jax.nn.softmax(s, axis=-1)
    o = jnp.einsum("bhqk,bhkd->bhqd", p, v)
    return o.transpose(0, 2, 1, 3).reshape(B, S, E)


if __name__ == "__main__":
    B, S, E, H = 2, 8, 32, 4
    root = jax.random.PRNGKey(0)
    k_param, k_q, k_k, k_v = jax.random.split(root, 4)

    query = jax.random.normal(k_q, (B, S, E), jnp.float32)
    key_in = jax.random.normal(k_k, (B, S, E), jnp.float32)
    value = jax.random.normal(k_v, (B, S, E), jnp.float32)

    # f32 MXU path: strict numerics check (cross- and self-attention calls).
    mha_f32 = MultiHeadAttentionPallas(E, H, k_param, compute_dtype=jnp.float32)
    out = jax.block_until_ready(mha_f32(query, key_in, value))
    ref = reference_forward(mha_f32, query, key_in, value)
    np.testing.assert_allclose(np.asarray(out), np.asarray(ref),
                               rtol=1e-2, atol=1e-2)

    out_self = jax.block_until_ready(mha_f32(query, query, query))
    ref_self = reference_forward(mha_f32, query, query, query)
    np.testing.assert_allclose(np.asarray(out_self), np.asarray(ref_self),
                               rtol=1e-2, atol=1e-2)

    # bf16 MXU path (production default): looser tolerance.
    mha_bf16 = MultiHeadAttentionPallas(E, H, k_param)
    out_bf16 = jax.block_until_ready(mha_bf16(query, key_in, value))
    np.testing.assert_allclose(np.asarray(out_bf16), np.asarray(ref),
                               rtol=5e-2, atol=5e-2)

    print("KERNEL_OK")
</pallas_src>

<mosaic_0001>
module attributes {stable_mosaic.version = 11 : i64} {
  func.func @_qkv_proj_kernel(%arg0: i32, %arg1: i32, %arg2: i32, %arg3: i32, %arg4: memref<16x32xf32, #tpu.memory_space<vmem>>, %arg5: memref<16x32xf32, #tpu.memory_space<vmem>>, %arg6: memref<16x32xf32, #tpu.memory_space<vmem>>, %arg7: memref<1x32x32xf32, #tpu.memory_space<vmem>>, %arg8: memref<1x1x32xf32, #tpu.memory_space<vmem>>, %arg9: memref<1x16x32xf32, #tpu.memory_space<vmem>>, %arg10: memref<16x32xf32, #tpu.memory_space<vmem>>) attributes {dimension_semantics = [#tpu.dimension_semantics<parallel>, #tpu.dimension_semantics<parallel>, #tpu.dimension_semantics<parallel>, #tpu.dimension_semantics<arbitrary>], iteration_bounds = array<i64: 3, 1, 1, 1>, scalar_prefetch = 0 : i64, scratch_operands = 1 : i64, tpu.core_type = #tpu.core_type<tc>, window_params = [{transform_indices = @transform_0, window_bounds = array<i64: 16, 32>}, {transform_indices = @transform_1, window_bounds = array<i64: 16, 32>}, {transform_indices = @transform_2, window_bounds = array<i64: 16, 32>}, {transform_indices = @transform_3, window_bounds = array<i64: 1, 32, 32>}, {transform_indices = @transform_4, window_bounds = array<i64: 1, 1, 32>}, {transform_indices = @transform_5, window_bounds = array<i64: 1, 16, 32>}]} {
    %c0_i32 = arith.constant 0 : i32
    %0 = arith.cmpi eq, %arg3, %c0_i32 : i32
    %1 = arith.extui %0 : i1 to i32
    %c0_i32_0 = arith.constant 0 : i32
    %2 = arith.cmpi ne, %1, %c0_i32_0 : i32
    scf.if %2 {
      %cst = arith.constant 0.000000e+00 : f32
      %17 = vector.broadcast %cst : f32 to vector<16x32xf32>
      %c0_9 = arith.constant 0 : index
      %c0_10 = arith.constant 0 : index
      %18 = vector.load %arg10[%c0_9, %c0_10] : memref<16x32xf32, #tpu.memory_space<vmem>>, vector<16x32xf32>
      tpu.vector_store %arg10[%c0_9, %c0_10], %17 {strides = array<i32>} : memref<16x32xf32, #tpu.memory_space<vmem>>, vector<16x32xf32>,
    } else {
    }
    %c0 = arith.constant 0 : index
    %c0_1 = arith.constant 0 : index
    %c0_2 = arith.constant 0 : index
    %3 = vector.load %arg7[%c0, %c0_1, %c0_2] : memref<1x32x32xf32, #tpu.memory_space<vmem>>, vector<1x32x32xf32>
    %4 = vector.shape_cast %3 : vector<1x32x32xf32> to vector<32x32xf32>
    %c0_i32_3 = arith.constant 0 : i32
    %5 = arith.cmpi eq, %arg0, %c0_i32_3 : i32
    %6 = arith.extui %5 : i1 to i32
    %c0_i32_4 = arith.constant 0 : i32
    %7 = arith.cmpi ne, %6, %c0_i32_4 : i32
    scf.if %7 {
      %c0_9 = arith.constant 0 : index
      %c0_10 = arith.constant 0 : index
      %17 = vector.load %arg10[%c0_9, %c0_10] : memref<16x32xf32, #tpu.memory_space<vmem>>, vector<16x32xf32>
      %c0_11 = arith.constant 0 : index
      %c0_12 = arith.constant 0 : index
      %18 = vector.load %arg4[%c0_11, %c0_12] : memref<16x32xf32, #tpu.memory_space<vmem>>, vector<16x32xf32>
      %cst = arith.constant dense<0.000000e+00> : vector<16x32xf32>
      %19 = tpu.matmul %18, %4, %cst {dimension_numbers = #tpu.dot_dimension_numbers<[1], [0], [0], [1], [0, 0, 1, 1], [], []>} : vector<16x32xf32>, vector<32x32xf32>, vector<16x32xf32> -> vector<16x32xf32>
      %20 = arith.addf %17, %19 : vector<16x32xf32>
      %c0_13 = arith.constant 0 : index
      %c0_14 = arith.constant 0 : index
      %21 = vector.load %arg10[%c0_13, %c0_14] : memref<16x32xf32, #tpu.memory_space<vmem>>, vector<16x32xf32>
      tpu.vector_store %arg10[%c0_13, %c0_14], %20 {strides = array<i32>} : memref<16x32xf32, #tpu.memory_space<vmem>>, vector<16x32xf32>,
    } else {
    }
    %c1_i32 = arith.constant 1 : i32
    %8 = arith.cmpi eq, %arg0, %c1_i32 : i32
    %9 = arith.extui %8 : i1 to i32
    %c0_i32_5 = arith.constant 0 : i32
    %10 = arith.cmpi ne, %9, %c0_i32_5 : i32
    scf.if %10 {
      %c0_9 = arith.constant 0 : index
      %c0_10 = arith.constant 0 : index
      %17 = vector.load %arg10[%c0_9, %c0_10] : memref<16x32xf32, #tpu.memory_space<vmem>>, vector<16x32xf32>
      %c0_11 = arith.constant 0 : index
      %c0_12 = arith.constant 0 : index
      %18 = vector.load %arg5[%c0_11, %c0_12] : memref<16x32xf32, #tpu.memory_space<vmem>>, vector<16x32xf32>
      %cst = arith.constant dense<0.000000e+00> : vector<16x32xf32>
      %19 = tpu.matmul %18, %4, %cst {dimension_numbers = #tpu.dot_dimension_numbers<[1], [0], [0], [1], [0, 0, 1, 1], [], []>} : vector<16x32xf32>, vector<32x32xf32>, vector<16x32xf32> -> vector<16x32xf32>
      %20 = arith.addf %17, %19 : vector<16x32xf32>
      %c0_13 = arith.constant 0 : index
      %c0_14 = arith.constant 0 : index
      %21 = vector.load %arg10[%c0_13, %c0_14] : memref<16x32xf32, #tpu.memory_space<vmem>>, vector<16x32xf32>
      tpu.vector_store %arg10[%c0_13, %c0_14], %20 {strides = array<i32>} : memref<16x32xf32, #tpu.memory_space<vmem>>, vector<16x32xf32>,
    } else {
    }
    %c2_i32 = arith.constant 2 : i32
    %11 = arith.cmpi eq, %arg0, %c2_i32 : i32
    %12 = arith.extui %11 : i1 to i32
    %c0_i32_6 = arith.constant 0 : i32
    %13 = arith.cmpi ne, %12, %c0_i32_6 : i32
    scf.if %13 {
      %c0_9 = arith.constant 0 : index
      %c0_10 = arith.constant 0 : index
      %17 = vector.load %arg10[%c0_9, %c0_10] : memref<16x32xf32, #tpu.memory_space<vmem>>, vector<16x32xf32>
      %c0_11 = arith.constant 0 : index
      %c0_12 = arith.constant 0 : index
      %18 = vector.load %arg6[%c0_11, %c0_12] : memref<16x32xf32, #tpu.memory_space<vmem>>, vector<16x32xf32>
      %cst = arith.constant dense<0.000000e+00> : vector<16x32xf32>
      %19 = tpu.matmul %18, %4, %cst {dimension_numbers = #tpu.dot_dimension_numbers<[1], [0], [0], [1], [0, 0, 1, 1], [], []>} : vector<16x32xf32>, vector<32x32xf32>, vector<16x32xf32> -> vector<16x32xf32>
      %20 = arith.addf %17, %19 : vector<16x32xf32>
      %c0_13 = arith.constant 0 : index
      %c0_14 = arith.constant 0 : index
      %21 = vector.load %arg10[%c0_13, %c0_14] : memref<16x32xf32, #tpu.memory_space<vmem>>, vector<16x32xf32>
      tpu.vector_store %arg10[%c0_13, %c0_14], %20 {strides = array<i32>} : memref<16x32xf32, #tpu.memory_space<vmem>>, vector<16x32xf32>,
    } else {
    }
    %c0_i32_7 = arith.constant 0 : i32
    %14 = arith.cmpi eq, %arg3, %c0_i32_7 : i32
    %15 = arith.extui %14 : i1 to i32
    %c0_i32_8 = arith.constant 0 : i32
    %16 = arith.cmpi ne, %15, %c0_i32_8 : i32
    scf.if %16 {
      %c0_9 = arith.constant 0 : index
      %c0_10 = arith.constant 0 : index
      %17 = vector.load %arg10[%c0_9, %c0_10] : memref<16x32xf32, #tpu.memory_space<vmem>>, vector<16x32xf32>
      %c0_11 = arith.constant 0 : index
      %c0_12 = arith.constant 0 : index
      %c0_13 = arith.constant 0 : index
      %18 = vector.load %arg8[%c0_11, %c0_12, %c0_13] : memref<1x1x32xf32, #tpu.memory_space<vmem>>, vector<1x1x32xf32>
      %19 = vector.shape_cast %18 : vector<1x1x32xf32> to vector<1x32xf32>
      %20 = vector.broadcast %19 : vector<1x32xf32> to vector<16x32xf32>
      %21 = arith.addf %17, %20 : vector<16x32xf32>
      %c0_14 = arith.constant 0 : index
      %c0_15 = arith.constant 0 : index
      %c0_16 = arith.constant 0 : index
      %22 = vector.load %arg9[%c0_14, %c0_15, %c0_16] : memref<1x16x32xf32, #tpu.memory_space<vmem>>, vector<1x16x32xf32>
      %23 = vector.shape_cast %22 : vector<1x16x32xf32> to vector<16x32xf32>
      %24 = vector.shape_cast %21 : vector<16x32xf32> to vector<1x16x32xf32>
      tpu.vector_store %arg9[%c0_14, %c0_15, %c0_16], %24 {strides = array<i32>} : memref<1x16x32xf32, #tpu.memory_space<vmem>>, vector<1x16x32xf32>,
    } else {
    }
    return
  }
  func.func @transform_0(%arg0: i32, %arg1: i32, %arg2: i32, %arg3: i32) -> (i32, i32) {
    %c0_i32 = arith.constant 0 : i32
    %0 = arith.cmpi eq, %arg0, %c0_i32 : i32
    %c0_i32_0 = arith.constant 0 : i32
    %1 = arith.select %0, %arg1, %c0_i32_0 : i32
    %c0_i32_1 = arith.constant 0 : i32
    %2 = arith.select %0, %arg3, %c0_i32_1 : i32
    %c0_i32_2 = arith.constant 0 : i32
    return %1, %2 : i32, i32
  }
  func.func @transform_1(%arg0: i32, %arg1: i32, %arg2: i32, %arg3: i32) -> (i32, i32) {
    %c1_i32 = arith.constant 1 : i32
    %0 = arith.cmpi eq, %arg0, %c1_i32 : i32
    %c0_i32 = arith.constant 0 : i32
    %1 = arith.select %0, %arg1, %c0_i32 : i32
    %c0_i32_0 = arith.constant 0 : i32
    %2 = arith.select %0, %arg3, %c0_i32_0 : i32
    %c0_i32_1 = arith.constant 0 : i32
    return %1, %2 : i32, i32
  }
  func.func @transform_2(%arg0: i32, %arg1: i32, %arg2: i32, %arg3: i32) -> (i32, i32) {
    %c2_i32 = arith.constant 2 : i32
    %0 = arith.cmpi eq, %arg0, %c2_i32 : i32
    %c0_i32 = arith.constant 0 : i32
    %1 = arith.select %0, %arg1, %c0_i32 : i32
    %c0_i32_0 = arith.constant 0 : i32
    %2 = arith.select %0, %arg3, %c0_i32_0 : i32
    %c0_i32_1 = arith.constant 0 : i32
    return %1, %2 : i32, i32
  }
  func.func @transform_3(%arg0: i32, %arg1: i32, %arg2: i32, %arg3: i32) -> (i32, i32, i32) {
    %c0_i32 = arith.constant 0 : i32
    return %arg0, %arg3, %arg2 : i32, i32, i32
  }
  func.func @transform_4(%arg0: i32, %arg1: i32, %arg2: i32, %arg3: i32) -> (i32, i32, i32) {
    %c0_i32 = arith.constant 0 : i32
    %c0_i32_0 = arith.constant 0 : i32
    return %arg0, %c0_i32, %arg2 : i32, i32, i32
  }
  func.func @transform_5(%arg0: i32, %arg1: i32, %arg2: i32, %arg3: i32) -> (i32, i32, i32) {
    %c0_i32 = arith.constant 0 : i32
    return %arg0, %arg1, %arg2 : i32, i32, i32
  }
}

</mosaic_0001>

<bundles_post_ra>
// kernel: tpu_custom_call.1
= control target key start
LH: loop header
LB: loop body
LE: loop exit
PB: predicated region body
PF: predicated region fallthrough
CT: control target
= control target key end

     0   :  { %s1653_s0 = inlined_call_operand.hbm [shape: f32[16,32], index: 0, kind: input, shape index: {}]   ;;  %s1654_s1 = inlined_call_operand.hbm [shape: f32[16,32], index: 1, kind: input, shape index: {}]   ;;  %s1655_s2 = inlined_call_operand.hbm [shape: f32[16,32], index: 2, kind: input, shape index: {}]   ;;  %s1656_s3 = inlined_call_operand.hbm [shape: f32[3,32,32], index: 3, kind: input, shape index: {}]   ;;  %s1657_s4 = inlined_call_operand.vmem [shape: f32[3,1,32], index: 4, kind: input, shape index: {}]   ;;  %s1658_s5 = inlined_call_operand.hbm [shape: f32[3,16,32], index: 5, kind: output, shape index: {}]  }
   0x1   :  { %1662 = sst [smem:[#allocation16_spill]] %s1653_s0 }
   0x2   :  { %10 = vsyncpa [#allocation4], 0 }
   0x3   :  { %12 = vsyncpa [#allocation4 + $0x1], 0 }
   0x4   :  { %13 = vsyncpa [#allocation7], 0 }
   0x5   :  { %15 = vsyncpa [#allocation7 + $0x1], 0 }
   0x6   :  { %16 = vsyncpa [#allocation10], 0 }
   0x7   :  { %18 = vsyncpa [#allocation10 + $0x1], 0 }
   0x8   :  { %19 = vsyncpa [#allocation5], 0 }
   0x9   :  { %21 = vsyncpa [#allocation5 + $0x1], 0  ;;  %s1395_s18 = smov 0   ;;  %s1397_s19 = smov 0  }
   0xa   :  { %s1399_s20 = smov 0   ;;  %s1401_s21 = smov 0  }
   0xb   :  { %s1403_s22 = smov 0   ;;  %s1405_s23 = smov 0  }
   0xc LB: > { %p174_p0 = scmp.eq.s32.totalorder %s1353_s23, 0  ;;  %p1095_p1 = scmp.lt.s32.totalorder %s1353_s23, 3  ;;  %s1353_s23 = sphi %s1405_s23, %s27_s23   ;;  %s1349_s22 = sphi %s1403_s22, %s1681_s22   ;;  %s1345_s21 = sphi %s1401_s21, %s1680_s21   ;;  %s1341_s20 = sphi %s1399_s20, %s1679_s20   ;;  %s1337_s19 = sphi %s1397_s19, %s1678_s19   ;;  %s1333_s18 = sphi %s1395_s18, %s1677_s18  }
   0xd   : > { %s286_s24 = sand.u32 1, %s1353_s23   ;;  %s1355_s26 = smov [#allocation6]  }
   0xe   : > { %p1432_p2 = pnand %p1095_p1, %p174_p0  ;;  %s301_s27 = sshll.u32 %s1355_s26, 4  ;;  %s302_s27 = int_to_ptr.vmem [resolvable:$true] %s301_s27 }
   0xf   : > { %p988_p3 = scmp.ge.s32.totalorder %s1353_s23, 1  ;;  %s1437_s28 = scalar_lea.sflag [#allocation7], %s286_s24 }
  0x10   : > { %p1161_p4 = pneg %p1432_p2  ;;  %s1170_s29 = scalar_lea.vmem %s302_s27, 256 }
  0x11   : > { %p1171_p5 = scmp.ne.s32.totalorder %s302_s27, %s1170_s29  ;;  %s1177_s30 = scalar_lea.vmem %s302_s27, 512 }
  0x12   : > { %p1178_p8 = scmp.lt.s32.totalorder %s302_s27, %s302_s27  ;;  %p1179_p9 = scmp.lt.s32.totalorder %s1177_s30, %s1170_s29 }
  0x13   : > { %p1173_p6 = pnand %p1171_p5, %p1161_p4 }
  0x14   : > { %p1180_p10 = por %p1179_p9, %p1178_p8 }
  0x15   : > { %p1174_p7 = pneg %p1173_p6 }
  0x17   : > { %p1181_p11 = pnand %p1180_p10, %p1174_p7 }
  0x19   : > { %1184 = shalt.err (!%p1181_p11)
}
  0x1a   : > { %s1659_s6 = smov 128   ;;  %s1660_s7 = smov 8  }
  0x1b   : > { %1084 = dma.hbm_to_vmem [thread:$0]  (!%p1432_p2), %s1654_s1, 256, %s302_s27, %s1437_s28, %s1659_s6, %s1659_s6, %s1660_s7  }
  0x1c   : > { %p367_p12 = scmp.lt.s32.totalorder %s1353_s23, 4  ;;  %s1358_s11 = smov [#allocation3]  }
  0x1d   : > { %s276_s12 = sshll.u32 %s1358_s11, 4  ;;  %s277_s12 = int_to_ptr.vmem [resolvable:$true] %s276_s12 }
  0x1e   : > { %p1456_p13 = pnand %p988_p3, %p367_p12  ;;  %s1196_s13 = scalar_lea.vmem %s277_s12, 256 }
  0x1f   : > { %p1197_p5 = scmp.ne.s32.totalorder %s277_s12, %s1196_s13  ;;  %s1203_s14 = scalar_lea.vmem %s277_s12, 512 }
  0x20   : > { %p1204_p8 = scmp.lt.s32.totalorder %s277_s12, %s277_s12  ;;  %p1205_p9 = scmp.lt.s32.totalorder %s1203_s14, %s1196_s13 }
  0x21   : > { %p1199_p6 = pnand %p1197_p5, %p1161_p4 }
  0x22   : > { %p1206_p10 = por %p1205_p9, %p1204_p8 }
  0x23   : > { %p1200_p7 = pneg %p1199_p6 }
  0x25   : > { %p1207_p11 = pnand %p1206_p10, %p1200_p7 }
  0x27   : > { %1210 = shalt.err (!%p1207_p11)
}
  0x28   : > { %s1665_s0 = sld [smem:[#allocation16_spill]]  ;;  %s1359_s17 = smov [#allocation8]  }
  0x29   : > { %s326_s24 = sshll.u32 %s1359_s17, 4  ;;  %s327_s24 = int_to_ptr.vmem [resolvable:$true] %s326_s24 }
  0x2a   : > { %s1222_s26 = scalar_lea.vmem %s327_s24, 256  ;;  %s1229_s27 = scalar_lea.vmem %s327_s24, 512 }
  0x2b   : > { %p1223_p3 = scmp.ne.s32.totalorder %s327_s24, %s1222_s26  ;;  %p1230_p6 = scmp.lt.s32.totalorder %s327_s24, %s327_s24 }
  0x2c   : > { %p1231_p7 = scmp.lt.s32.totalorder %s1229_s27, %s1222_s26 }
  0x2d   : > { %p1225_p12 = pnand %p1223_p3, %p1161_p4 }
  0x2e   : > { %1081 = dma.hbm_to_vmem [thread:$0]  (!%p1432_p2), %s1665_s0, 256, %s277_s12, [#allocation4], %s1659_s6, %s1659_s6, %s1660_s7  }
  0x2f   : > { %p1226_p5 = pneg %p1225_p12  ;;  %p1232_p8 = por %p1231_p7, %p1230_p6 }
  0x31   : > { %p1233_p9 = pnand %p1232_p8, %p1226_p5 }
  0x33   : > { %1236 = shalt.err (!%p1233_p9)
}
  0x34   : > { %1087 = dma.hbm_to_vmem [thread:$0]  (!%p1432_p2), %s1655_s2, 256, %s327_s24, %s1437_s28, %s1659_s6, %s1659_s6, %s1660_s7  }
  0x35   : > { %s1484_s8 = sadd.s32 4294967295, %s1353_s23   ;;  %s979_s25 = sadd.s32 4294967294, %s1353_s23  }
  0x36   : > { %s53_s9 = sadd.s32 1, %s1349_s22  ;;  %s166_s11 = sadd.s32 1, %s1341_s20 }
  0x37   : > { %p55_p4 = scmp.ge.s32.totalorder %s53_s9, 3  ;;  %p173_p10 = scmp.ne.s32.totalorder %s1341_s20, %s1337_s19 }
  0x38   : > { %p179_p11 = scmp.ne.s32.totalorder %s1337_s19, %s1333_s18  ;;  %p1661_p3 = scmp.eq.s32.totalorder %s1484_s8, 0 }
  0x39   : > { %s1683_s9 = smov (%p55_p4, %s53_s9), 0  ;;  %p1498_p2 = por %p174_p0, %p173_p10 }
  0x3a   : > { %p1504_p12 = por %p1661_p3, %p179_p11  ;;  %s159_s13 = ssub.s32 %s1349_s22, %s1683_s9 }
  0x3b   : > { %p235_p5 = scmp.eq.s32.totalorder %s1484_s8, 2  ;;  %p164_p6 = scmp.eq.s32.totalorder %s159_s13, 0 }
  0x3c   : > { %p241_p7 = scmp.eq.s32.totalorder %s979_s25, 2  ;;  %s336_s15 = sand.u32 1, %s1341_s20  }
  0x3d   : > { %p1511_p8 = por %p235_p5, %p173_p10  ;;  %s985_s24 = sshll.u32 %s336_s15, 5 }
  0x3e   : > { %s1517_s16 = scalar_select %p164_p6, %s1341_s20, %s166_s11  }
  0x3f   : > { %p1519_p0 = por %p241_p7, %p179_p11  ;;  %s1009_s26 = sshll.u32 %s1349_s22, 9 }
  0x40   : > { %s349_s30 = scalar_lea.hbm %s1656_s3, %s1009_s26  ;;  %s340_s6 = scalar_lea.vmem [#allocation9], %s985_s24 }
  0x41   : > { %s350_s13 = sshll.u32 %s340_s6, 4  ;;  %p1531_p9 = pnand %p1095_p1, %p1498_p2  ;;  %s351_s13 = int_to_ptr.vmem [resolvable:$true] %s350_s13 }
  0x42   : > { %s337_s11 = scalar_lea.sflag [#allocation10], %s336_s15  ;;  %s1250_s7 = scalar_lea.vmem %s351_s13, 512 }
  0x43   : > { %p1239_p4 = pneg %p1531_p9  ;;  %p1251_p10 = scmp.ne.s32.totalorder %s351_s13, %s1250_s7 }
  0x44   : > { %s1360_s0 = smov [#allocation9]  }
  0x45   : > { %p1253_p11 = pnand %p1251_p10, %p1239_p4  ;;  %s1255_s27 = sshll.u32 %s1360_s0, 4  ;;  %s1256_s27 = int_to_ptr.vmem [resolvable:$false] %s1255_s27 }
  0x46   : > { %s1257_s24 = scalar_lea.vmem %s1256_s27, 1024  ;;  %p1258_p6 = scmp.lt.s32.totalorder %s351_s13, %s1256_s27 }
  0x47   : > { %p1254_p5 = pneg %p1253_p11  ;;  %p1259_p7 = scmp.lt.s32.totalorder %s1257_s24, %s1250_s7 }
  0x49   : > { %p1260_p3 = por %p1259_p7, %p1258_p6 }
  0x4b   : > { %p1261_p1 = pnand %p1260_p3, %p1254_p5 }
  0x4d   : > { %1264 = shalt.err (!%p1261_p1)
}
  0x4e   : > { %s1671_s6 = smov 8   ;;  %s1672_s28 = smov 128  }
  0x4f   : > { %1090 = dma.hbm_to_vmem [thread:$0]  (!%p1531_p9), %s349_s30, 512, %s351_s13, %s337_s11, %s1672_s28, %s1672_s28, %s1671_s6  }
  0x50   : > { %371 = sbr.rel (%p1456_p13) target bundleno = 757 (0x2f5), region = 40  ;;  %p1673_p2 = scmp.eq.s32.totalorder (!%p1456_p13), %s1484_s8, 0 }
  0x55   : > { %1316 = dma.done.wait (%p1673_p2), [#allocation4], 256   ;;  %p1674_p4 = pmov %p1673_p2 }
  0x56   : > { %s382_s0 = sand.u32 1, %s1484_s8   ;;  %p1675_p3 = pmov %p1673_p2 }
  0x57   : > { %1318 = vsyncadd (%p1674_p4), [#allocation4], 4294967040  ;;  %s383_s7 = scalar_lea.sflag [#allocation7], %s382_s0 }
  0x58   : > { %1320 = dma.done.wait (%p1675_p3), %s383_s7, 512   ;;  %p1676_p10 = pmov %p1673_p2 }
  0x59   : > { %s1554_s15 = sand.u32 1, %s1337_s19  }
  0x5a   : > { %1322 = vsyncadd (%p1676_p10), %s383_s7, 4294966784  ;;  %s992_s10 = sshll.u32 %s1554_s15, 5  ;;  %s401_s26 = scalar_lea.sflag [#allocation10], %s1554_s15 }
  0x5b   : > { %s404_s29 = scalar_lea.vmem [#allocation9], %s992_s10 }
  0x5c   : > { %1324 = dma.done.wait (%p1504_p12), %s401_s26, 512  }
  0x5d   : > { %1326 = vsyncadd (%p1504_p12), %s401_s26, 4294966784  ;;  %s993_s30 = sshll.u32 %s1554_s15, 4  ;;  %p465_p13 = scmp.lt.s32.totalorder %s1345_s21, 2  ;;  %vm476_vm0 = vcmask 261120   ;;  %v1361_v0 = vmov 0.0   ;;  %v479_v1 = vld [vmem:[%s404_s29] sm:$0xff] }
  0x5e   : > { %477 = vst.msk [vmem:[#allocation2] sm:$0xff] %vm476_vm0, %v1361_v0  ;;  %478 = vst.msk [vmem:[#allocation2 + $0x8] sm:$0xff] %vm476_vm0, %v1361_v0  ;;  %v480_v2 = vld [vmem:[%s404_s29 + $0x8] sm:$0xff]  ;;  %v481_v3 = vld [vmem:[%s404_s29 + $0x10] sm:$0xff]  ;;  %s1573_s12 = scalar_lea.vmem [#allocation11], %s993_s30  ;;  %p994_p12 = scmp.ne.s32.totalorder %s1345_s21, 0 }
  0x5f   : > { %s1567_s8 = scalar_select %p465_p13, %s1345_s21, 2  ;;  %v482_v4 = vld [vmem:[%s404_s29 + $0x18] sm:$0xff] }
  0x60   : > { %486 = sbr.rel (%p994_p12) target bundleno = 307 (0x133), region = 64 }
  0x61   : > { %s470_s11 = scalar_lea.vmem %s1657_s4, %s1567_s8 }
  0x65   : > { %1029 = vmatprep.subr.mxu0 %v482_v4  ;;  %v489_v5 = vld [vmem:[#allocation3] sm:$0xff]  ;;  %v490_v6 = vld [vmem:[#allocation3 + $0x8] sm:$0xff]  ;;  %v488_v7 = vld [vmem:[#allocation2 + $0x8] sm:$0xff] }
  0x66   : > { %1030 = vmatpush3.msra.mxu0 %v482_v4  ;;  %1037 = vmatprep.mubr.msk.f32.mxu0 %vm476_vm0, %v489_v5  ;;  %v487_v9 = vld [vmem:[#allocation2] sm:$0xff] }
  0x67   : > { %1031 = vmatprep.subr.mxu0 %v481_v3 }
  0x68   : > { %1032 = vmatpush3.msra.mxu0 %v481_v3 }
  0x69   : > { %1033 = vmatprep.subr.mxu0 %v480_v2 }
  0x6a   : > { %1034 = vmatpush3.msra.mxu0 %v480_v2 }
  0x6b   : > { %1035 = vmatprep.subr.mxu0 %v479_v1 }
  0x6c   : > { %1036 = vmatpush3.msra.mxu0 %v479_v1 }
  0x6d   : > { %1038 = vmatmul.mubr.msk.f32.vlgmr.msra.gmra.mxu0 %vm476_vm0, %v490_v6 }
 0x12d   : > { %v1039_v8 = vpop.f32.mrf.mxu0 }
 0x12e   : > { %v574_v10 = vadd.f32 %v1039_v8, %v488_v7 }
 0x12f   : > { %v564_v11 = vpop.f32.mrf.mxu0 }
 0x130   : > { %576 = vst.msk [vmem:[#allocation2 + $0x8] sm:$0xff] %vm476_vm0, %v574_v10  ;;  %v573_v12 = vadd.f32 %v564_v11, %v487_v9 }
 0x132   : > { %575 = vst.msk [vmem:[#allocation2] sm:$0xff] %vm476_vm0, %v573_v12 }
 0x133 PF: > { %p997_p9 = scmp.ne.s32.totalorder %s1345_s21, 1 }
 0x135   : > { %580 = sbr.rel (%p997_p9) target bundleno = 520 (0x208), region = 68 }
 0x13a   : > { %1040 = vmatprep.subr.mxu0 %v482_v4  ;;  %v583_v13 = vld [vmem:[#allocation6] sm:$0xff]  ;;  %v584_v14 = vld [vmem:[#allocation6 + $0x8] sm:$0xff]  ;;  %v582_v15 = vld [vmem:[#allocation2 + $0x8] sm:$0xff] }
 0x13b   : > { %1041 = vmatpush3.msra.mxu0 %v482_v4  ;;  %1048 = vmatprep.mubr.msk.f32.mxu0 %vm476_vm0, %v583_v13  ;;  %v581_v17 = vld [vmem:[#allocation2] sm:$0xff] }
 0x13c   : > { %1042 = vmatprep.subr.mxu0 %v481_v3 }
 0x13d   : > { %1043 = vmatpush3.msra.mxu0 %v481_v3 }
 0x13e   : > { %1044 = vmatprep.subr.mxu0 %v480_v2 }
 0x13f   : > { %1045 = vmatpush3.msra.mxu0 %v480_v2 }
 0x140   : > { %1046 = vmatprep.subr.mxu0 %v479_v1 }
 0x141   : > { %1047 = vmatpush3.msra.mxu0 %v479_v1 }
 0x142   : > { %1049 = vmatmul.mubr.msk.f32.vlgmr.msra.gmra.mxu0 %vm476_vm0, %v584_v14 }
 0x202   : > { %v1050_v16 = vpop.f32.mrf.mxu0 }
 0x203   : > { %v668_v18 = vadd.f32 %v1050_v16, %v582_v15 }
 0x204   : > { %v658_v19 = vpop.f32.mrf.mxu0 }
 0x205   : > { %670 = vst.msk [vmem:[#allocation2 + $0x8] sm:$0xff] %vm476_vm0, %v668_v18  ;;  %v667_v20 = vadd.f32 %v658_v19, %v581_v17 }
 0x207   : > { %669 = vst.msk [vmem:[#allocation2] sm:$0xff] %vm476_vm0, %v667_v20 }
 0x208 PF: > { %p1000_p11 = scmp.ne.s32.totalorder %s1345_s21, 2 }
 0x20a   : > { %674 = sbr.rel (%p1000_p11) target bundleno = 733 (0x2dd), region = 72 }
 0x20f   : > { %1051 = vmatprep.subr.mxu0 %v482_v4  ;;  %v677_v21 = vld [vmem:[#allocation8] sm:$0xff]  ;;  %v678_v22 = vld [vmem:[#allocation8 + $0x8] sm:$0xff]  ;;  %v676_v23 = vld [vmem:[#allocation2 + $0x8] sm:$0xff] }
 0x210   : > { %1052 = vmatpush3.msra.mxu0 %v482_v4  ;;  %1059 = vmatprep.mubr.msk.f32.mxu0 %vm476_vm0, %v677_v21  ;;  %v675_v25 = vld [vmem:[#allocation2] sm:$0xff] }
 0x211   : > { %1053 = vmatprep.subr.mxu0 %v481_v3 }
 0x212   : > { %1054 = vmatpush3.msra.mxu0 %v481_v3 }
 0x213   : > { %1055 = vmatprep.subr.mxu0 %v480_v2 }
 0x214   : > { %1056 = vmatpush3.msra.mxu0 %v480_v2 }
 0x215   : > { %1057 = vmatprep.subr.mxu0 %v479_v1 }
 0x216   : > { %1058 = vmatpush3.msra.mxu0 %v479_v1 }
 0x217   : > { %1060 = vmatmul.mubr.msk.f32.vlgmr.msra.gmra.mxu0 %vm476_vm0, %v678_v22 }
 0x2d7   : > { %v1061_v24 = vpop.f32.mrf.mxu0 }
 0x2d8   : > { %v762_v26 = vadd.f32 %v1061_v24, %v676_v23 }
 0x2d9   : > { %v752_v27 = vpop.f32.mrf.mxu0 }
 0x2da   : > { %764 = vst.msk [vmem:[#allocation2 + $0x8] sm:$0xff] %vm476_vm0, %v762_v26  ;;  %v761_v28 = vadd.f32 %v752_v27, %v675_v25 }
 0x2dc   : > { %763 = vst.msk [vmem:[#allocation2] sm:$0xff] %vm476_vm0, %v761_v28 }
 0x2dd PF: > { %v1003_v30 = vld [vmem:[%s470_s11] ss:$0 sm:$0xff]  ;;  %s1010_s6 = sshll.u32 %s1345_s21, 8  ;;  %s799_s10 = sshll.u32 %s1573_s12, 4  ;;  %s1602_s10 = int_to_ptr.vmem [resolvable:$true] %s799_s10 }
 0x2de   : > { %s1599_s7 = scalar_lea.hbm %s1658_s5, %s1010_s6  ;;  %s783_s26 = scalar_lea.sflag [#allocation5], %s1554_s15 }
 0x2df   : > { %s1265_s29 = scalar_lea.vmem %s1602_s10, 256  ;;  %s1362_s21 = smov [#allocation11]  }
 0x2e0   : > { %p1266_p5 = scmp.ne.s32.totalorder %s1602_s10, %s1265_s29  ;;  %s1269_s30 = sshll.u32 %s1362_s21, 4  ;;  %s1270_s30 = int_to_ptr.vmem [resolvable:$false] %s1269_s30 }
 0x2e1   : > { %v769_v31 = vld [vmem:[#allocation2 + $0x8] sm:$0xff]  ;;  %s1271_s8 = scalar_lea.vmem %s1270_s30, 512  ;;  %p1272_p1 = scmp.lt.s32.totalorder %s1602_s10, %s1270_s30 }
 0x2e2   : > { %v778_v33 = vadd.f32 %v1003_v30, %v769_v31  ;;  %p1267_p6 = pnand %p1266_p5, %p1511_p8  ;;  %p1273_p2 = scmp.lt.s32.totalorder %s1271_s8, %s1265_s29 }
 0x2e3   : > { %v768_v29 = vld [vmem:[#allocation2] sm:$0xff] }
 0x2e4   : > { %v777_v32 = vadd.f32 %v1003_v30, %v768_v29  ;;  %781 = vst.msk [vmem:[%s1573_s12 + $0x8] sm:$0xff] %vm476_vm0, %v778_v33  ;;  %p1268_p7 = pneg %p1267_p6  ;;  %p1274_p4 = por %p1273_p2, %p1272_p1 }
 0x2e6   : > { %780 = vst.msk [vmem:[%s1573_s12] sm:$0xff] %vm476_vm0, %v777_v32  ;;  %p1275_p3 = pnand %p1274_p4, %p1268_p7 }
 0x2e8   : > { %1278 = shalt.err (!%p1275_p3)
}
 0x2e9   : > { %s1279_s13 = scalar_lea.hbm %s1599_s7, 256  ;;  %s1283_s12 = scalar_lea.hbm %s1658_s5, 768 }
 0x2ea   : > { %p1280_p10 = scmp.ne.s32.totalorder %s1599_s7, %s1279_s13  ;;  %p1284_p9 = scmp.lt.s32.totalorder %s1599_s7, %s1658_s5 }
 0x2eb   : > { %p1285_p11 = scmp.lt.s32.totalorder %s1283_s12, %s1279_s13 }
 0x2ec   : > { %p1281_p13 = pnand %p1280_p10, %p1511_p8 }
 0x2ed   : > { %p1286_p5 = por %p1285_p11, %p1284_p9 }
 0x2ee   : > { %p1282_p12 = pneg %p1281_p13 }
 0x2f0   : > { %p1287_p6 = pnand %p1286_p5, %p1282_p12 }
 0x2f2   : > { %1290 = shalt.err (!%p1287_p6)
}
 0x2f3   : > { %s1363_s6 = smov 128   ;;  %s1364_s28 = smov 8  }
 0x2f4   : > { %1076 = dma.vmem_to_hbm [thread:$0]  (%p1511_p8), %s1602_s10, 256, %s1599_s7, %s783_s26, %s1363_s6, %s1363_s6, %s1364_s28  }
 0x2f5 PF: > { %p1102_p7 = scmp.ge.s32.totalorder %s1353_s23, 2  ;;  %s814_s0 = sand.u32 1, %s1333_s18  }
 0x2f6   : > { %s815_s29 = scalar_lea.sflag [#allocation5], %s814_s0 }
 0x2f7   : > { %p1092_p1 = pnand %p1102_p7, %p1519_p0 }
 0x2f9   : > { %p1093_p2 = pneg %p1092_p1 }
 0x2fb   : > { %1328 = dma.done.wait (%p1093_p2), %s815_s29, 256  }
 0x2fc   : > { %1330 = vsyncadd (%p1093_p2), %s815_s29, 4294967040  ;;  %s27_s23 = sadd.s32 1, %s1353_s23   ;;  %s1677_s18 = smov %s1337_s19 }
 0x2fd   : > { %p24_p4 = scmp.ge.s32.totalorder %s27_s23, 5   ;;  %s1678_s19 = smov %s1341_s20 }
 0x2fe   : > { %s1679_s20 = smov %s1517_s16  ;;  %s1680_s21 = smov %s1349_s22 }
 0x2ff   : > { %s1681_s22 = smov %s1683_s9  ;;  %26 = sbr.rel (!%p24_p4) target bundleno = 12 (0xc), region = 145 }
 0x304   :  { %820 = vsyncpa [#allocation4], 1 }
 0x305   :  { %822 = vsyncpa [#allocation4 + $0x1], 1 }
 0x306   :  { %823 = vsyncpa [#allocation7], 1 }
 0x307   :  { %825 = vsyncpa [#allocation7 + $0x1], 1 }
 0x308   :  { %826 = vsyncpa [#allocation10], 1 }
 0x309   :  { %828 = vsyncpa [#allocation10 + $0x1], 1 }
 0x30a   :  { %829 = vsyncpa [#allocation5], 1 }
 0x30b   :  { %831 = vsyncpa [#allocation5 + $0x1], 1 }

</bundles_post_ra>
